<compile_context>
chip_gen: v6e
topology: v6e:2x2x1
jax: 0.10.0
libtpu: 0.0.40
codegen_flags: <defaults>
</compile_context>

<pallas_src>
import jax
import jax.numpy as jnp
from jax.experimental import pallas as pl
from jax.experimental.pallas import tpu as pltpu

FOCAL_ALPHA = 0.8
FOCAL_GAMMA = 2.0          # fixed at 2.0 -> kernel uses jnp.square
FOCAL_LOSS_WEIGHT = 20.0
DICE_LOSS_WEIGHT = 1.0
IOU_LOSS_WEIGHT = 1.0

_PAIR_BLOCK_BUDGET = 4 * 1024 * 1024   # bytes of (pred + target) tile per grid step
_PAD_LOGIT = -30000.0                  # padded pixels -> sigmoid=0, bce=0, focal=0


def _round_up(x, m):
    return ((x + m - 1) // m) * m


def _sam_partials_kernel(pred_ref, tgt_ref,
                         focal_ref, inter_ref, psum_ref, tsum_ref):
    """Accumulate per-mask partial sums over a (BM, T_HW) tile.

    Outputs (each (BM, 1) f32, resident across the HW grid axis):
      focal_ref : sum over pixels of the focal loss term
      inter_ref : sum(sigmoid(x) * t)
      psum_ref  : sum(sigmoid(x))
      tsum_ref  : sum(t)
    """
    @pl.when(pl.program_id(1) == 0)
    def _():
        focal_ref[...] = jnp.zeros_like(focal_ref)
        inter_ref[...] = jnp.zeros_like(inter_ref)
        psum_ref[...] = jnp.zeros_like(psum_ref)
        tsum_ref[...] = jnp.zeros_like(tsum_ref)

    x = pred_ref[...].astype(jnp.float32)    # (BM, T_HW) logits
    t = tgt_ref[...].astype(jnp.float32)     # (BM, T_HW) binary target

    # Shared exponential for sigmoid and numerically stable BCE-with-logits.
    e = jnp.exp(-jnp.abs(x))
    r = 1.0 / (1.0 + e)
    sig = jnp.where(x >= 0.0, r, 1.0 - r)                       # sigmoid(x)
    ce = jnp.maximum(x, 0.0) - x * t + jnp.log1p(e)             # BCE, 'none'

    p_t = sig * t + (1.0 - sig) * (1.0 - t)
    alpha_t = FOCAL_ALPHA * t + (1.0 - FOCAL_ALPHA) * (1.0 - t)
    focal = alpha_t * jnp.square(1.0 - p_t) * ce                # gamma == 2.0

    focal_ref[...] += jnp.sum(focal, axis=-1, keepdims=True)
    inter_ref[...] += jnp.sum(sig * t, axis=-1, keepdims=True)
    psum_ref[...] += jnp.sum(sig, axis=-1, keepdims=True)
    tsum_ref[...] += jnp.sum(t, axis=-1, keepdims=True)


def _choose_tiles(n_masks, hw, pair_bytes):
    """Pick (BM masks/block, T_HW pixels/block) under the VMEM block budget."""
    row_bytes = hw * pair_bytes
    if 8 * row_bytes <= _PAIR_BLOCK_BUDGET:
        t_hw = hw                                    # full rows, no HW tiling
        bm = _PAIR_BLOCK_BUDGET // max(row_bytes, 1)
        bm = max(8, min(512, (bm // 8) * 8))
    else:
        bm = 8                                       # huge masks: tile the HW axis
        t_hw = _PAIR_BLOCK_BUDGET // (8 * pair_bytes)
        t_hw = max(128, (t_hw // 128) * 128)
    bm = min(bm, _round_up(n_masks, 8))
    return bm, t_hw


def sam_loss(predictions, targets,
             focal_loss_weight=FOCAL_LOSS_WEIGHT,
             dice_loss_weight=DICE_LOSS_WEIGHT,
             iou_loss_weight=IOU_LOSS_WEIGHT):
    pred_masks = predictions['masks']        # keep model dtype (bf16 stays bf16)
    target_masks = targets['masks']
    B, C, H, W = pred_masks.shape
    HW = H * W

    # --- glue (plain JAX): combine instance masks, nearest resize to pred size
    if target_masks.shape[1] > 1:
        combined = (jnp.sum(target_masks, axis=1, keepdims=True) > 0
                    ).astype(pred_masks.dtype)        # 0/1 exact in any float dtype
    else:
        combined = target_masks
    if combined.shape[-2:] != (H, W):
        Hin, Win = combined.shape[-2], combined.shape[-1]
        # matches F.interpolate(mode='nearest'): src = floor(dst * in / out)
        rows = (jnp.arange(H) * Hin) // H
        cols = (jnp.arange(W) * Win) // W
        combined = combined[:, :, rows, :][:, :, :, cols]

    # Lane-dense flattened layout: (n_masks, H*W).
    n_masks = B * C
    pred_flat = pred_masks.reshape(n_masks, HW)
    tgt_flat = jnp.broadcast_to(combined, (B, C, H, W)).reshape(n_masks, HW)

    pair_bytes = pred_flat.dtype.itemsize + tgt_flat.dtype.itemsize
    bm, t_hw = _choose_tiles(n_masks, HW, pair_bytes)
    n_pad = _round_up(n_masks, bm)
    hw_pad = _round_up(HW, t_hw)

    if n_pad != n_masks or hw_pad != HW:
        # Padded logits of -30000 give sigmoid=0, bce=0, focal=0 exactly, so
        # padded pixels contribute nothing to any partial sum.
        pred_flat = jnp.pad(pred_flat, ((0, n_pad - n_masks), (0, hw_pad - HW)),
                            constant_values=_PAD_LOGIT)
        tgt_flat = jnp.pad(tgt_flat, ((0, n_pad - n_masks), (0, hw_pad - HW)))

    grid = (n_pad // bm, hw_pad // t_hw)
    part_shape = jax.ShapeDtypeStruct((n_pad, 1), jnp.float32)
    part_spec = pl.BlockSpec((bm, 1), lambda i, j: (i, 0))
    in_spec = pl.BlockSpec((bm, t_hw), lambda i, j: (i, j))

    cost = pl.CostEstimate(
        flops=int(25 * n_pad * hw_pad),
        transcendentals=int(2 * n_pad * hw_pad),
        bytes_accessed=int(pred_flat.size * pred_flat.dtype.itemsize
                           + tgt_flat.size * tgt_flat.dtype.itemsize
                           + 4 * n_pad * 4),
    )

    focal_s, inter, psum, tsum = pl.pallas_call(
        _sam_partials_kernel,
        out_shape=(part_shape, part_shape, part_shape, part_shape),
        grid_spec=pltpu.PrefetchScalarGridSpec(
            num_scalar_prefetch=0,
            grid=grid,
            in_specs=[in_spec, in_spec],
            out_specs=(part_spec, part_spec, part_spec, part_spec),
        ),
        compiler_params=pltpu.CompilerParams(
            dimension_semantics=("parallel", "arbitrary"),
            vmem_limit_bytes=64 * 1024 * 1024),
        cost_estimate=cost,
    )(pred_flat, tgt_flat)

    # Final (tiny) reductions in plain JAX, over the valid masks only.
    focal_s = focal_s[:n_masks, 0]
    inter = inter[:n_masks, 0]
    psum = psum[:n_masks, 0]
    tsum = tsum[:n_masks, 0]

    focal = jnp.sum(focal_s) / float(n_masks * HW)          # mean over all pixels
    dice = jnp.mean(1.0 - (2.0 * inter + 1.0) / (psum + tsum + 1.0))
    iou = jnp.mean(1.0 - inter / (psum + tsum - inter + 1e-6))

    iou_pred = predictions['iou_predictions'].astype(jnp.float32)
    iou_tgt = targets['iou_targets'].astype(jnp.float32)
    iou_pred_mse = jnp.mean(jnp.square(iou_pred - iou_tgt))

    total = (focal_loss_weight * focal + dice_loss_weight * dice
             + iou_loss_weight * iou + iou_pred_mse)
    return {
        'focal_loss': focal,
        'dice_loss': dice,
        'iou_loss': iou,
        'iou_prediction_loss': iou_pred_mse,
        'total_loss': total,
    }


def _reference_loss(predictions, targets):
    """Pure-JAX reference matching the PyTorch module semantics."""
    pred = predictions['masks'].astype(jnp.float32)
    tgt = targets['masks']
    B, C, H, W = pred.shape
    if tgt.shape[1] > 1:
        comb = (jnp.sum(tgt, axis=1, keepdims=True) > 0).astype(jnp.float32)
    else:
        comb = tgt.astype(jnp.float32)
    if comb.shape[-2:] != (H, W):
        Hin, Win = comb.shape[-2], comb.shape[-1]
        comb = comb[:, :, (jnp.arange(H) * Hin) // H, :][:, :, :, (jnp.arange(W) * Win) // W]
    comb = jnp.broadcast_to(comb, (B, C, H, W))

    sig = jax.nn.sigmoid(pred)
    ce = jnp.maximum(pred, 0.0) - pred * comb + jnp.log1p(jnp.exp(-jnp.abs(pred)))
    p_t = sig * comb + (1 - sig) * (1 - comb)
    alpha_t = FOCAL_ALPHA * comb + (1 - FOCAL_ALPHA) * (1 - comb)
    focal = jnp.mean(alpha_t * (1 - p_t) ** 2 * ce)

    inter = jnp.sum(sig * comb, axis=(-2, -1))
    total = jnp.sum(sig, axis=(-2, -1)) + jnp.sum(comb, axis=(-2, -1))
    dice = jnp.mean(1.0 - (2.0 * inter + 1.0) / (total + 1.0))
    iou = jnp.mean(1.0 - inter / (total - inter + 1e-6))
    mse = jnp.mean((predictions['iou_predictions'].astype(jnp.float32)
                    - targets['iou_targets'].astype(jnp.float32)) ** 2)
    return {
        'focal_loss': focal, 'dice_loss': dice, 'iou_loss': iou,
        'iou_prediction_loss': mse,
        'total_loss': FOCAL_LOSS_WEIGHT * focal + DICE_LOSS_WEIGHT * dice
                      + IOU_LOSS_WEIGHT * iou + mse,
    }


if __name__ == "__main__":
    key = jax.random.PRNGKey(0)
    k1, k2, k3, k4 = jax.random.split(key, 4)

    B, C, H, W = 2, 1, 16, 16          # pred masks (SAM single-mask output)
    N_INST, Ht, Wt = 3, 32, 32         # multi-instance targets at 2x resolution

    pred_masks = jax.random.normal(k1, (B, C, H, W), dtype=jnp.float32) * 2.0
    target_masks = (jax.random.uniform(k2, (B, N_INST, Ht, Wt)) > 0.7).astype(jnp.float32)
    iou_predictions = jax.random.uniform(k3, (B, C), dtype=jnp.float32)
    iou_targets = jax.random.uniform(k4, (B, C), dtype=jnp.float32)

    predictions = {'masks': pred_masks, 'iou_predictions': iou_predictions}
    targets = {'masks': target_masks, 'iou_targets': iou_targets}

    loss_dict = sam_loss(predictions, targets)
    loss_dict = jax.tree_util.tree_map(jax.block_until_ready, loss_dict)

    ref = _reference_loss(predictions, targets)
    for k in ref:
        assert abs(float(loss_dict[k]) - float(ref[k])) < 1e-4, (
            k, float(loss_dict[k]), float(ref[k]))

    print("KERNEL_OK")
</pallas_src>

<mosaic_0001>
module attributes {stable_mosaic.version = 11 : i64} {
  func.func @_sam_partials_kernel(%arg0: i32, %arg1: i32, %arg2: memref<8x256xf32, #tpu.memory_space<vmem>>, %arg3: memref<8x256xf32, #tpu.memory_space<vmem>>, %arg4: memref<8x1xf32, #tpu.memory_space<vmem>>, %arg5: memref<8x1xf32, #tpu.memory_space<vmem>>, %arg6: memref<8x1xf32, #tpu.memory_space<vmem>>, %arg7: memref<8x1xf32, #tpu.memory_space<vmem>>) attributes {dimension_semantics = [#tpu.dimension_semantics<parallel>, #tpu.dimension_semantics<arbitrary>], iteration_bounds = array<i64: 1, 1>, scalar_prefetch = 0 : i64, scratch_operands = 0 : i64, tpu.core_type = #tpu.core_type<tc>, window_params = [{transform_indices = @transform_0, window_bounds = array<i64: 8, 256>}, {transform_indices = @transform_1, window_bounds = array<i64: 8, 256>}, {transform_indices = @transform_2, window_bounds = array<i64: 8, 1>}, {transform_indices = @transform_3, window_bounds = array<i64: 8, 1>}, {transform_indices = @transform_4, window_bounds = array<i64: 8, 1>}, {transform_indices = @transform_5, window_bounds = array<i64: 8, 1>}]} {
    %c0_i32 = arith.constant 0 : i32
    %0 = arith.cmpi eq, %arg1, %c0_i32 : i32
    %1 = arith.extui %0 : i1 to i32
    %c0_i32_0 = arith.constant 0 : i32
    %2 = arith.cmpi ne, %1, %c0_i32_0 : i32
    scf.if %2 {
      %cst_35 = arith.constant 0.000000e+00 : f32
      %64 = vector.broadcast %cst_35 : f32 to vector<8x1xf32>
      %c0_36 = arith.constant 0 : index
      %c0_37 = arith.constant 0 : index
      %65 = vector.load %arg4[%c0_36, %c0_37] : memref<8x1xf32, #tpu.memory_space<vmem>>, vector<8x1xf32>
      tpu.vector_store %arg4[%c0_36, %c0_37], %64 {strides = array<i32>} : memref<8x1xf32, #tpu.memory_space<vmem>>, vector<8x1xf32>,
      %cst_38 = arith.constant 0.000000e+00 : f32
      %66 = vector.broadcast %cst_38 : f32 to vector<8x1xf32>
      %c0_39 = arith.constant 0 : index
      %c0_40 = arith.constant 0 : index
      %67 = vector.load %arg5[%c0_39, %c0_40] : memref<8x1xf32, #tpu.memory_space<vmem>>, vector<8x1xf32>
      tpu.vector_store %arg5[%c0_39, %c0_40], %66 {strides = array<i32>} : memref<8x1xf32, #tpu.memory_space<vmem>>, vector<8x1xf32>,
      %cst_41 = arith.constant 0.000000e+00 : f32
      %68 = vector.broadcast %cst_41 : f32 to vector<8x1xf32>
      %c0_42 = arith.constant 0 : index
      %c0_43 = arith.constant 0 : index
      %69 = vector.load %arg6[%c0_42, %c0_43] : memref<8x1xf32, #tpu.memory_space<vmem>>, vector<8x1xf32>
      tpu.vector_store %arg6[%c0_42, %c0_43], %68 {strides = array<i32>} : memref<8x1xf32, #tpu.memory_space<vmem>>, vector<8x1xf32>,
      %cst_44 = arith.constant 0.000000e+00 : f32
      %70 = vector.broadcast %cst_44 : f32 to vector<8x1xf32>
      %c0_45 = arith.constant 0 : index
      %c0_46 = arith.constant 0 : index
      %71 = vector.load %arg7[%c0_45, %c0_46] : memref<8x1xf32, #tpu.memory_space<vmem>>, vector<8x1xf32>
      tpu.vector_store %arg7[%c0_45, %c0_46], %70 {strides = array<i32>} : memref<8x1xf32, #tpu.memory_space<vmem>>, vector<8x1xf32>,
    } else {
    }
    %c0 = arith.constant 0 : index
    %c0_1 = arith.constant 0 : index
    %3 = vector.load %arg2[%c0, %c0_1] : memref<8x256xf32, #tpu.memory_space<vmem>>, vector<8x256xf32>
    %c0_2 = arith.constant 0 : index
    %c0_3 = arith.constant 0 : index
    %4 = vector.load %arg3[%c0_2, %c0_3] : memref<8x256xf32, #tpu.memory_space<vmem>>, vector<8x256xf32>
    %5 = math.absf %3 : vector<8x256xf32>
    %cst = arith.constant 0.000000e+00 : f32
    %6 = vector.broadcast %cst : f32 to vector<8x256xf32>
    %7 = arith.subf %6, %5 : vector<8x256xf32>
    %8 = math.exp %7 : vector<8x256xf32>
    %cst_4 = arith.constant 1.000000e+00 : f32
    %9 = vector.broadcast %cst_4 : f32 to vector<8x256xf32>
    %10 = arith.addf %9, %8 : vector<8x256xf32>
    %cst_5 = arith.constant 1.000000e+00 : f32
    %11 = vector.broadcast %cst_5 : f32 to vector<8x256xf32>
    %12 = arith.divf %11, %10 : vector<8x256xf32>
    %cst_6 = arith.constant 0.000000e+00 : f32
    %13 = vector.broadcast %cst_6 : f32 to vector<8x256xf32>
    %14 = arith.cmpf oge, %3, %13 : vector<8x256xf32>
    %cst_7 = arith.constant 1.000000e+00 : f32
    %15 = vector.broadcast %cst_7 : f32 to vector<8x256xf32>
    %16 = arith.subf %15, %12 : vector<8x256xf32>
    %17 = arith.select %14, %12, %16 : vector<8x256xi1>, vector<8x256xf32>
    %cst_8 = arith.constant 0.000000e+00 : f32
    %18 = vector.broadcast %cst_8 : f32 to vector<8x256xf32>
    %19 = arith.maximumf %3, %18 : vector<8x256xf32>
    %20 = arith.mulf %3, %4 : vector<8x256xf32>
    %21 = arith.subf %19, %20 : vector<8x256xf32>
    %22 = math.log1p %8 : vector<8x256xf32>
    %23 = arith.addf %21, %22 : vector<8x256xf32>
    %24 = arith.mulf %17, %4 : vector<8x256xf32>
    %cst_9 = arith.constant 1.000000e+00 : f32
    %25 = vector.broadcast %cst_9 : f32 to vector<8x256xf32>
    %26 = arith.subf %25, %17 : vector<8x256xf32>
    %cst_10 = arith.constant 1.000000e+00 : f32
    %27 = vector.broadcast %cst_10 : f32 to vector<8x256xf32>
    %28 = arith.subf %27, %4 : vector<8x256xf32>
    %29 = arith.mulf %26, %28 : vector<8x256xf32>
    %30 = arith.addf %24, %29 : vector<8x256xf32>
    %cst_11 = arith.constant 8.000000e-01 : f32
    %31 = vector.broadcast %cst_11 : f32 to vector<8x256xf32>
    %32 = arith.mulf %31, %4 : vector<8x256xf32>
    %cst_12 = arith.constant 1.000000e+00 : f32
    %33 = vector.broadcast %cst_12 : f32 to vector<8x256xf32>
    %34 = arith.subf %33, %4 : vector<8x256xf32>
    %cst_13 = arith.constant 2.000000e-01 : f32
    %35 = vector.broadcast %cst_13 : f32 to vector<8x256xf32>
    %36 = arith.mulf %35, %34 : vector<8x256xf32>
    %37 = arith.addf %32, %36 : vector<8x256xf32>
    %cst_14 = arith.constant 1.000000e+00 : f32
    %38 = vector.broadcast %cst_14 : f32 to vector<8x256xf32>
    %39 = arith.subf %38, %30 : vector<8x256xf32>
    %40 = arith.mulf %39, %39 : vector<8x256xf32>
    %41 = arith.mulf %37, %40 : vector<8x256xf32>
    %42 = arith.mulf %41, %23 : vector<8x256xf32>
    %c0_15 = arith.constant 0 : index
    %c0_16 = arith.constant 0 : index
    %43 = vector.load %arg4[%c0_15, %c0_16] : memref<8x1xf32, #tpu.memory_space<vmem>>, vector<8x1xf32>
    %cst_17 = arith.constant dense<0.000000e+00> : vector<8xf32>
    %44 = vector.multi_reduction <add>, %42, %cst_17 [1] : vector<8x256xf32> to vector<8xf32>
    %45 = vector.shape_cast %44 : vector<8xf32> to vector<8x1xf32>
    %46 = arith.addf %43, %45 : vector<8x1xf32>
    %c0_18 = arith.constant 0 : index
    %c0_19 = arith.constant 0 : index
    %47 = vector.load %arg4[%c0_18, %c0_19] : memref<8x1xf32, #tpu.memory_space<vmem>>, vector<8x1xf32>
    tpu.vector_store %arg4[%c0_18, %c0_19], %46 {strides = array<i32>} : memref<8x1xf32, #tpu.memory_space<vmem>>, vector<8x1xf32>,
    %c0_20 = arith.constant 0 : index
    %c0_21 = arith.constant 0 : index
    %48 = vector.load %arg5[%c0_20, %c0_21] : memref<8x1xf32, #tpu.memory_space<vmem>>, vector<8x1xf32>
    %49 = arith.mulf %17, %4 : vector<8x256xf32>
    %cst_22 = arith.constant dense<0.000000e+00> : vector<8xf32>
    %50 = vector.multi_reduction <add>, %49, %cst_22 [1] : vector<8x256xf32> to vector<8xf32>
    %51 = vector.shape_cast %50 : vector<8xf32> to vector<8x1xf32>
    %52 = arith.addf %48, %51 : vector<8x1xf32>
    %c0_23 = arith.constant 0 : index
    %c0_24 = arith.constant 0 : index
    %53 = vector.load %arg5[%c0_23, %c0_24] : memref<8x1xf32, #tpu.memory_space<vmem>>, vector<8x1xf32>
    tpu.vector_store %arg5[%c0_23, %c0_24], %52 {strides = array<i32>} : memref<8x1xf32, #tpu.memory_space<vmem>>, vector<8x1xf32>,
    %c0_25 = arith.constant 0 : index
    %c0_26 = arith.constant 0 : index
    %54 = vector.load %arg6[%c0_25, %c0_26] : memref<8x1xf32, #tpu.memory_space<vmem>>, vector<8x1xf32>
    %cst_27 = arith.constant dense<0.000000e+00> : vector<8xf32>
    %55 = vector.multi_reduction <add>, %17, %cst_27 [1] : vector<8x256xf32> to vector<8xf32>
    %56 = vector.shape_cast %55 : vector<8xf32> to vector<8x1xf32>
    %57 = arith.addf %54, %56 : vector<8x1xf32>
    %c0_28 = arith.constant 0 : index
    %c0_29 = arith.constant 0 : index
    %58 = vector.load %arg6[%c0_28, %c0_29] : memref<8x1xf32, #tpu.memory_space<vmem>>, vector<8x1xf32>
    tpu.vector_store %arg6[%c0_28, %c0_29], %57 {strides = array<i32>} : memref<8x1xf32, #tpu.memory_space<vmem>>, vector<8x1xf32>,
    %c0_30 = arith.constant 0 : index
    %c0_31 = arith.constant 0 : index
    %59 = vector.load %arg7[%c0_30, %c0_31] : memref<8x1xf32, #tpu.memory_space<vmem>>, vector<8x1xf32>
    %cst_32 = arith.constant dense<0.000000e+00> : vector<8xf32>
    %60 = vector.multi_reduction <add>, %4, %cst_32 [1] : vector<8x256xf32> to vector<8xf32>
    %61 = vector.shape_cast %60 : vector<8xf32> to vector<8x1xf32>
    %62 = arith.addf %59, %61 : vector<8x1xf32>
    %c0_33 = arith.constant 0 : index
    %c0_34 = arith.constant 0 : index
    %63 = vector.load %arg7[%c0_33, %c0_34] : memref<8x1xf32, #tpu.memory_space<vmem>>, vector<8x1xf32>
    tpu.vector_store %arg7[%c0_33, %c0_34], %62 {strides = array<i32>} : memref<8x1xf32, #tpu.memory_space<vmem>>, vector<8x1xf32>,
    return
  }
  func.func @transform_0(%arg0: i32, %arg1: i32) -> (i32, i32) {
    %c0_i32 = arith.constant 0 : i32
    return %arg0, %arg1 : i32, i32
  }
  func.func @transform_1(%arg0: i32, %arg1: i32) -> (i32, i32) {
    %c0_i32 = arith.constant 0 : i32
    return %arg0, %arg1 : i32, i32
  }
  func.func @transform_2(%arg0: i32, %arg1: i32) -> (i32, i32) {
    %c0_i32 = arith.constant 0 : i32
    %c0_i32_0 = arith.constant 0 : i32
    return %arg0, %c0_i32 : i32, i32
  }
  func.func @transform_3(%arg0: i32, %arg1: i32) -> (i32, i32) {
    %c0_i32 = arith.constant 0 : i32
    %c0_i32_0 = arith.constant 0 : i32
    return %arg0, %c0_i32 : i32, i32
  }
  func.func @transform_4(%arg0: i32, %arg1: i32) -> (i32, i32) {
    %c0_i32 = arith.constant 0 : i32
    %c0_i32_0 = arith.constant 0 : i32
    return %arg0, %c0_i32 : i32, i32
  }
  func.func @transform_5(%arg0: i32, %arg1: i32) -> (i32, i32) {
    %c0_i32 = arith.constant 0 : i32
    %c0_i32_0 = arith.constant 0 : i32
    return %arg0, %c0_i32 : i32, i32
  }
}

</mosaic_0001>

<bundles_post_ra>
// kernel: tpu_custom_call.1
= control target key start
LH: loop header
LB: loop body
LE: loop exit
PB: predicated region body
PF: predicated region fallthrough
CT: control target
= control target key end

     0   :  { %11 = vsyncpa [#allocation3], 0  ;;  %s335_s0 = inlined_call_operand.hbm [shape: f32[8,256], index: 0, kind: input, shape index: {}]   ;;  %s336_s1 = inlined_call_operand.hbm [shape: f32[8,256], index: 1, kind: input, shape index: {}]   ;;  %s337_s2 = inlined_call_operand.vmem [shape: f32[8,1], index: 2, kind: output, shape index: {0}]   ;;  %s338_s3 = inlined_call_operand.vmem [shape: f32[8,1], index: 3, kind: output, shape index: {1}]   ;;  %s339_s4 = inlined_call_operand.vmem [shape: f32[8,1], index: 4, kind: output, shape index: {2}]   ;;  %s340_s5 = inlined_call_operand.vmem [shape: f32[8,1], index: 5, kind: output, shape index: {3}]  }
   0x1   :  { %12 = vsyncpa [#allocation5], 0  ;;  %s224_s18 = smov [#allocation2]   ;;  %s225_s20 = smov [#allocation4]  }
   0x2   :  { %s19_s19 = sshll.u32 %s224_s18, 4  ;;  %s29_s21 = sshll.u32 %s225_s20, 4  ;;  %s20_s19 = int_to_ptr.vmem [resolvable:$true] %s19_s19  ;;  %s30_s21 = int_to_ptr.vmem [resolvable:$true] %s29_s21 }
   0x3   :  { %s188_s22 = scalar_lea.vmem %s20_s19, 256  ;;  %p193_p1 = scmp.lt.s32.totalorder %s20_s19, %s20_s19 }
   0x4   :  { %p189_p0 = scmp.ne.s32.totalorder %s20_s19, %s188_s22  ;;  %p194_p2 = scmp.lt.s32.totalorder %s188_s22, %s188_s22 }
   0x6   :  { %p195_p3 = por %p194_p2, %p193_p1 }
   0x8   :  { %p196_p4 = pnand %p195_p3, %p189_p0 }
   0xa   :  { %199 = shalt.err (!%p196_p4)
}
   0xb   :  { %22 = dma.hbm_to_vmem [thread:$0]  %s335_s0, 256, %s20_s19, [#allocation3]  }
   0xc   :  { %s208_s25 = scalar_lea.vmem %s30_s21, 256  ;;  %p213_p6 = scmp.lt.s32.totalorder %s30_s21, %s30_s21 }
   0xd   :  { %p209_p5 = scmp.ne.s32.totalorder %s30_s21, %s208_s25  ;;  %p214_p7 = scmp.lt.s32.totalorder %s208_s25, %s208_s25 }
   0xf   :  { %p215_p8 = por %p214_p7, %p213_p6 }
  0x11   :  { %p216_p9 = pnand %p215_p8, %p209_p5 }
  0x13   :  { %219 = shalt.err (!%p216_p9)
}
  0x14   :  { %32 = dma.hbm_to_vmem [thread:$0]  %s336_s1, 256, %s30_s21, [#allocation5]  }
  0x15   :  { %220 = dma.done.wait [#allocation3], 256  }
  0x16   :  { %221 = vsyncadd [#allocation3], 4294967040 }
  0x17   :  { %222 = dma.done.wait [#allocation5], 256  }
  0x18   :  { %223 = vsyncadd [#allocation5], 4294967040  ;;  %vm43_vm0 = vcmask 7168   ;;  %v226_v0 = vmov 0.0   ;;  %v279_v1 = vld [vmem:[#allocation2] sm:$0xff]  ;;  %v281_v2 = vld [vmem:[#allocation2 + $0x8] sm:$0xff] }
  0x19   :  { %46 = vst.msk [vmem:[%s339_s4] sm:$0xff] %vm43_vm0, %v226_v0  ;;  %44 = vst.msk [vmem:[%s337_s2] sm:$0xff] %vm43_vm0, %v226_v0  ;;  %v52_v3 = vand.u32 2147483647, %v279_v1  ;;  %v53_v4 = vand.u32 2147483647, %v281_v2 }
  0x1a   :  { %45 = vst.msk [vmem:[%s338_s3] sm:$0xff] %vm43_vm0, %v226_v0  ;;  %47 = vst.msk [vmem:[%s340_s5] sm:$0xff] %vm43_vm0, %v226_v0  ;;  %v50_v14 = vld [vmem:[#allocation4] sm:$0xff]  ;;  %v51_v15 = vld [vmem:[#allocation4 + $0x8] sm:$0xff]  ;;  %vm66_vm1 = vcmp.ge.f32.partialorder %v279_v1, 0.0  ;;  %vm67_vm2 = vcmp.ge.f32.partialorder %v281_v2, 0.0 }
  0x1b   :  { %v54_v5 = vsub.f32 0.0, %v52_v3  ;;  %v55_v6 = vsub.f32 0.0, %v53_v4  ;;  %v74_v17 = vmul.f32 %v50_v14, %v279_v1  ;;  %v102_v19 = vsub.f32 1.0, %v50_v14 }
  0x1c   :  { %v103_v20 = vsub.f32 1.0, %v51_v15  ;;  %v72_v24 = vmax.f32 %v279_v1, 0.0  ;;  %v73_v25 = vmax.f32 %v281_v2, 0.0  ;;  %v75_v26 = vmul.f32 %v51_v15, %v281_v2 }
  0x1d   :  { %v56_v7 = vmul.f32 1.442695, %v54_v5  ;;  %v58_v8 = vmul.f32 1.442695, %v55_v6  ;;  %v108_v31 = vmul.f32 0.8, %v50_v14  ;;  %v142_v52 = vadd.f32 %v51_v15, %v50_v14 }
  0x1e   :  { %v109_v35 = vmul.f32 0.8, %v51_v15  ;;  %v110_v36 = vmul.f32 0.2, %v102_v19  ;;  %v111_v51 = vmul.f32 0.2, %v103_v20  ;;  %v76_v54 = vsub.f32 %v72_v24, %v74_v17 }
  0x1f   :  { %168 = vpow2.f32 %v56_v7  ;;  %v77_v56 = vsub.f32 %v73_v25, %v75_v26 }
  0x20   :  { %170 = vpow2.f32 %v58_v8  ;;  %v112_v59 = vadd.f32 %v110_v36, %v108_v31  ;;  %v113_v61 = vadd.f32 %v111_v51, %v109_v35 }
  0x2c   :  { %v169_v9 = vpop.eup %168 }
  0x2d   :  { %v171_v10 = vpop.eup %170  ;;  %v60_v11 = vadd.f32 1.0, %v169_v9  ;;  %v81_v13 = vmul.f32 -0.5, %v169_v9  ;;  %v84_v29 = vand.u32 2147483647, %v169_v9 }
  0x2e   :  { %v61_v12 = vadd.f32 1.0, %v171_v10  ;;  %v90_v16 = vmul.f32 -0.5, %v171_v10  ;;  %v93_v34 = vand.u32 2147483647, %v171_v10 }
  0x2f   :  { %172 = vrcp.f32 %v60_v11  ;;  %v82_v21 = vadd.f32 1.0, %v81_v13  ;;  %vm295_vm3 = vcmp.lt.f32.partialorder %v84_v29, 0.0004427343 }
  0x30   :  { %174 = vrcp.f32 %v61_v12  ;;  %v91_v30 = vadd.f32 1.0, %v90_v16  ;;  %vm299_vm4 = vcmp.lt.f32.partialorder %v93_v34, 0.0004427343 }
  0x31   :  { %176 = vlog2.f32 %v60_v11  ;;  %v83_v40 = vmul.f32 %v169_v9, %v82_v21  ;;  %v135_v9 = vld [vmem:[%s339_s4] sm:$0xff] }
  0x32   :  { %178 = vlog2.f32 %v61_v12  ;;  %v92_v48 = vmul.f32 %v171_v10, %v91_v30  ;;  %v141_v12 = vld [vmem:[%s340_s5] sm:$0xff] }
  0x3c   :  { %v173_v18 = vpop.eup %172 }
  0x3d   :  { %v175_v22 = vpop.eup %174  ;;  %v68_v23 = vsub.f32 1.0, %v173_v18 }
  0x3e   :  { %v177_v27 = vpop.eup %176  ;;  %v69_v28 = vsub.f32 1.0, %v175_v22 }
  0x3f   :  { %v179_v32 = vpop.eup %178  ;;  %v70_v33 = vsel %vm66_vm1, %v173_v18, %v68_v23  ;;  %v80_v44 = vmul.f32 0.6931472, %v177_v27  ;;  %v129_v18 = vld [vmem:[%s338_s3] sm:$0xff] }
  0x40   :  { %v71_v37 = vsel %vm67_vm2, %v175_v22, %v69_v28  ;;  %v98_v38 = vmul.f32 %v70_v33, %v50_v14  ;;  %v100_v39 = vsub.f32 1.0, %v70_v33  ;;  %v89_v47 = vmul.f32 0.6931472, %v179_v32 }
  0x41   :  { %v99_v41 = vmul.f32 %v71_v37, %v51_v15  ;;  %v101_v42 = vsub.f32 1.0, %v71_v37  ;;  %v136_v43 = vadd.f32 %v71_v37, %v70_v33  ;;  %v86_v57 = vsel %vm295_vm3, %v83_v40, %v80_v44  ;;  %v122_v15 = vld [vmem:[%s337_s2] sm:$0xff] }
  0x42   :  { %v104_v45 = vmul.f32 %v102_v19, %v100_v39  ;;  %v95_v58 = vsel %vm299_vm4, %v92_v48, %v89_v47  ;;  %v96_v63 = vadd.f32 %v86_v57, %v76_v54 }
  0x43   :  { %v105_v49 = vmul.f32 %v103_v20, %v101_v42  ;;  %137 = vadd.xlane.f32.xlu1 %v136_v43  ;;  %v97_v1 = vadd.f32 %v95_v58, %v77_v56  ;;  %v130_v8 = vadd.f32 %v99_v41, %v98_v38 }
  0x44   :  { %v106_v53 = vadd.f32 %v104_v45, %v98_v38 }
  0x45   :  { %v107_v55 = vadd.f32 %v105_v49, %v99_v41 }
  0x46   :  { %v114_v60 = vsub.f32 1.0, %v106_v53 }
  0x47   :  { %v115_v62 = vsub.f32 1.0, %v107_v55  ;;  %143 = vadd.xlane.f32.xlu1 %v142_v52 }
  0x48   :  { %v116_v0 = vmul.f32 %v114_v60, %v114_v60 }
  0x49   :  { %v117_v2 = vmul.f32 %v115_v62, %v115_v62 }
  0x4a   :  { %v118_v3 = vmul.f32 %v116_v0, %v112_v59 }
  0x4b   :  { %v119_v4 = vmul.f32 %v117_v2, %v113_v61 }
  0x4c   :  { %v120_v5 = vmul.f32 %v118_v3, %v96_v63 }
  0x4d   :  { %v121_v6 = vmul.f32 %v119_v4, %v97_v1 }
  0x4f   :  { %v123_v7 = vadd.f32 %v121_v6, %v120_v5 }
  0x51   :  { %124 = vadd.xlane.f32.xlu0 %v123_v7 }
  0x55   :  { %131 = vadd.xlane.f32.xlu0 %v130_v8 }
  0xcc   :  { %v138_v10 = vpop.xlane.xlu1 %137 }
  0xcd   :  { %v139_v11 = vadd.f32 %v138_v10, %v135_v9 }
  0xcf   :  { %140 = vst.msk [vmem:[%s339_s4] sm:$0xff] %vm43_vm0, %v139_v11 }
  0xd0   :  { %v144_v13 = vpop.xlane.xlu1 %143 }
  0xd1   :  { %v145_v14 = vadd.f32 %v144_v13, %v141_v12 }
  0xd3   :  { %146 = vst.msk [vmem:[%s340_s5] sm:$0xff] %vm43_vm0, %v145_v14 }
  0xda   :  { %v125_v16 = vpop.xlane.xlu0 %124 }
  0xdb   :  { %v126_v17 = vadd.f32 %v125_v16, %v122_v15 }
  0xdd   :  { %128 = vst.msk [vmem:[%s337_s2] sm:$0xff] %vm43_vm0, %v126_v17 }
  0xde   :  { %v132_v19 = vpop.xlane.xlu0 %131 }
  0xdf   :  { %v133_v20 = vadd.f32 %v132_v19, %v129_v18 }
  0xe1   :  { %134 = vst.msk [vmem:[%s338_s3] sm:$0xff] %vm43_vm0, %v133_v20 }
  0xe2   :  { %163 = vsyncpa [#allocation3], 1 }
  0xe3   :  { %164 = vsyncpa [#allocation5], 1 }

</bundles_post_ra>
